<compile_context>
chip_gen: v7x
topology: tpu7x:2x2x1
jax: 0.10.0
libtpu: 0.0.40
codegen_flags: <defaults>
</compile_context>

<pallas_src>
import functools

import jax
import jax.numpy as jnp
from jax import lax
from jax.experimental import pallas as pl
from jax.experimental.pallas import tpu as pltpu


def _focal_kernel(x_ref, t_ref, out_ref, acc_ref, *,
                  alpha, gamma, ignore_index, n_cols):
    j = pl.program_id(1)
    tile = acc_ref.shape[-1]

    @pl.when(j == 0)
    def _():
        acc_ref[...] = jnp.zeros_like(acc_ref)

    x = x_ref[0].astype(jnp.float32)        # (C, tile) logits, classes on sublanes
    t = t_ref[0]                            # (1, tile) int32 class ids

    # column validity: real spatial position AND not ignore_index
    col = j * tile + lax.broadcasted_iota(jnp.int32, (1, tile), 1)
    valid = jnp.logical_and(t != ignore_index, col < n_cols)

    # numerically stable log-softmax over the class (sublane) axis
    m = jnp.max(x, axis=0, keepdims=True)                               # (1, tile)
    lse = m + jnp.log(jnp.sum(jnp.exp(x - m), axis=0, keepdims=True))   # (1, tile)

    # logit at target class via one-hot select along sublanes (no dyn gather)
    cls = lax.broadcasted_iota(jnp.int32, x.shape, 0)                   # (C, tile)
    x_t = jnp.sum(jnp.where(cls == t, x, 0.0), axis=0, keepdims=True)   # (1, tile)

    # CE; clamp >= 0 so pt = exp(-ce) <= 1 even under fp rounding.
    ce = jnp.maximum(lse - x_t, 0.0)
    ce = jnp.where(valid, ce, 0.0)          # ignored / padded columns -> 0 loss

    if gamma == 0.0:
        fl = alpha * ce
    else:
        pt = jnp.exp(-ce)
        omp = 1.0 - pt
        gi = int(gamma)
        if float(gi) == float(gamma) and gi >= 1:
            # integer gamma: repeated multiplies (VPU) instead of exp/log (EUP)
            mod = omp
            for _ in range(gi - 1):
                mod = mod * omp
        else:
            # generic non-integer gamma fallback
            mod = jnp.power(jnp.maximum(omp, 0.0), gamma)
        fl = alpha * mod * ce

    # lane-dense vector accumulation; single cross-lane reduce in the epilogue
    acc_ref[...] += fl

    @pl.when(j == pl.num_programs(1) - 1)
    def _():
        out_ref[...] = jnp.sum(acc_ref[...], axis=-1, keepdims=True).reshape(1, 1, 1)


def focal_loss_pallas(inputs, targets, *, alpha=1.0, gamma=0.0,
                      size_average=True, ignore_index=255,
                      target_block_bytes=2 << 20):
    """inputs: (N, C, H, W) float logits; targets: (N, H, W) int class ids."""
    N, C, H, W = inputs.shape
    HW = H * W
    rows = N * HW

    # transpose-free, lane-dense views
    x = inputs.reshape(N, C, HW)
    t = targets.reshape(N, 1, HW).astype(jnp.int32)

    # largest lane tile (multiple of 128) keeping a logits block near
    # target_block_bytes; ragged last tile is masked in-kernel (no jnp.pad).
    itemsize = jnp.dtype(x.dtype).itemsize
    max_tile = max(128, (target_block_bytes // (C * itemsize)) // 128 * 128)
    hw_pad = pl.cdiv(HW, 128) * 128
    tile = min(max_tile, hw_pad)
    grid = (N, pl.cdiv(HW, tile))

    kernel = functools.partial(
        _focal_kernel,
        alpha=float(alpha),
        gamma=float(gamma),
        ignore_index=int(ignore_index),
        n_cols=HW,
    )

    partials = pl.pallas_call(
        kernel,
        out_shape=jax.ShapeDtypeStruct((N, 1, 1), jnp.float32),
        grid_spec=pltpu.PrefetchScalarGridSpec(
            num_scalar_prefetch=0,
            grid=grid,
            in_specs=[
                pl.BlockSpec((1, C, tile), lambda n, j: (n, 0, j)),
                pl.BlockSpec((1, 1, tile), lambda n, j: (n, 0, j)),
            ],
            out_specs=pl.BlockSpec((1, 1, 1), lambda n, j: (n, 0, 0)),
            scratch_shapes=[pltpu.VMEM((1, tile), jnp.float32)],
        ),
        compiler_params=pltpu.CompilerParams(
            # batch axis is independent (per-image partial sums) -> megacore
            dimension_semantics=("parallel", "arbitrary")),
    )(x, t)

    total = jnp.sum(partials)
    if size_average:
        # PyTorch .mean() over reduction='none' divides by ALL elements
        # (ignored positions contribute 0 to the numerator but count in the
        # denominator).
        return total / jnp.float32(rows)
    return total


def _focal_loss_ref(inputs, targets, *, alpha=1.0, gamma=0.0,
                    size_average=True, ignore_index=255):
    """Pure-JAX reference for sanity checking."""
    N, C, H, W = inputs.shape
    x = jnp.transpose(inputs, (0, 2, 3, 1)).reshape(-1, C).astype(jnp.float32)
    t = targets.reshape(-1).astype(jnp.int32)
    lse = jax.nn.logsumexp(x, axis=-1)
    x_t = jnp.take_along_axis(x, jnp.clip(t, 0, C - 1)[:, None], axis=-1)[:, 0]
    ce = jnp.where(t == ignore_index, 0.0, lse - x_t)
    pt = jnp.exp(-ce)
    fl = alpha * (1.0 - pt) ** gamma * ce
    return fl.mean() if size_average else fl.sum()


if __name__ == "__main__":
    key = jax.random.PRNGKey(0)
    k1, k2, k3 = jax.random.split(key, 3)

    N, C, H, W = 2, 4, 16, 16
    inputs = jax.random.normal(k1, (N, C, H, W), dtype=jnp.float32)
    targets = jax.random.randint(k2, (N, H, W), 0, C, dtype=jnp.int32)
    # sprinkle a few ignore_index positions
    ignore_mask = jax.random.uniform(k3, (N, H, W)) < 0.1
    targets = jnp.where(ignore_mask, 255, targets)

    out = focal_loss_pallas(inputs, targets, alpha=1.0, gamma=2.0,
                            size_average=True, ignore_index=255)
    out = jax.block_until_ready(out)
    ref = _focal_loss_ref(inputs, targets, alpha=1.0, gamma=2.0,
                          size_average=True, ignore_index=255)
    assert jnp.allclose(out, ref, rtol=1e-5, atol=1e-5), (out, ref)

    # default (gamma=0) + sum path
    out2 = jax.block_until_ready(
        focal_loss_pallas(inputs, targets, alpha=1.0, gamma=0.0,
                          size_average=False, ignore_index=255))
    ref2 = _focal_loss_ref(inputs, targets, alpha=1.0, gamma=0.0,
                           size_average=False, ignore_index=255)
    assert jnp.allclose(out2, ref2, rtol=1e-5, atol=1e-4), (out2, ref2)

    # non-integer gamma fallback path
    out3 = jax.block_until_ready(
        focal_loss_pallas(inputs, targets, alpha=0.5, gamma=1.5,
                          size_average=True, ignore_index=255))
    ref3 = _focal_loss_ref(inputs, targets, alpha=0.5, gamma=1.5,
                           size_average=True, ignore_index=255)
    assert jnp.allclose(out3, ref3, rtol=1e-5, atol=1e-5), (out3, ref3)

    print("KERNEL_OK")
</pallas_src>

<mosaic_0001>
module attributes {stable_mosaic.version = 11 : i64} {
  func.func @_focal_kernel(%arg0: i32, %arg1: i32, %arg2: memref<1x4x256xf32, #tpu.memory_space<vmem>>, %arg3: memref<1x1x256xi32, #tpu.memory_space<vmem>>, %arg4: memref<1x1x1xf32, #tpu.memory_space<vmem>>, %arg5: memref<1x256xf32, #tpu.memory_space<vmem>>) attributes {dimension_semantics = [#tpu.dimension_semantics<parallel>, #tpu.dimension_semantics<arbitrary>], iteration_bounds = array<i64: 2, 1>, scalar_prefetch = 0 : i64, scratch_operands = 1 : i64, tpu.core_type = #tpu.core_type<tc>, window_params = [{transform_indices = @transform_0, window_bounds = array<i64: 1, 4, 256>}, {transform_indices = @transform_1, window_bounds = array<i64: 1, 1, 256>}, {transform_indices = @transform_2, window_bounds = array<i64: 1, 1, 1>}]} {
    %c0_i32 = arith.constant 0 : i32
    %0 = arith.cmpi eq, %arg1, %c0_i32 : i32
    %1 = arith.extui %0 : i1 to i32
    %c0_i32_0 = arith.constant 0 : i32
    %2 = arith.cmpi ne, %1, %c0_i32_0 : i32
    scf.if %2 {
      %cst_21 = arith.constant 0.000000e+00 : f32
      %52 = vector.broadcast %cst_21 : f32 to vector<1x256xf32>
      %c0_22 = arith.constant 0 : index
      %c0_23 = arith.constant 0 : index
      %53 = vector.load %arg5[%c0_22, %c0_23] : memref<1x256xf32, #tpu.memory_space<vmem>>, vector<1x256xf32>
      tpu.vector_store %arg5[%c0_22, %c0_23], %52 {strides = array<i32>} : memref<1x256xf32, #tpu.memory_space<vmem>>, vector<1x256xf32>,
    } else {
    }
    %c0 = arith.constant 0 : index
    %c0_1 = arith.constant 0 : index
    %c0_2 = arith.constant 0 : index
    %3 = vector.load %arg2[%c0, %c0_1, %c0_2] : memref<1x4x256xf32, #tpu.memory_space<vmem>>, vector<1x4x256xf32>
    %4 = vector.shape_cast %3 : vector<1x4x256xf32> to vector<4x256xf32>
    %c0_3 = arith.constant 0 : index
    %c0_4 = arith.constant 0 : index
    %c0_5 = arith.constant 0 : index
    %5 = vector.load %arg3[%c0_3, %c0_4, %c0_5] : memref<1x1x256xi32, #tpu.memory_space<vmem>>, vector<1x1x256xi32>
    %6 = vector.shape_cast %5 : vector<1x1x256xi32> to vector<1x256xi32>
    %c256_i32 = arith.constant 256 : i32
    %7 = arith.muli %arg1, %c256_i32 : i32
    %8 = tpu.iota {dimensions = array<i32: 1>} : vector<1x256xi32>
    %9 = vector.broadcast %7 : i32 to vector<1x256xi32>
    %10 = arith.addi %9, %8 : vector<1x256xi32>
    %c255_i32 = arith.constant 255 : i32
    %11 = vector.broadcast %c255_i32 : i32 to vector<1x256xi32>
    %12 = arith.cmpi ne, %6, %11 : vector<1x256xi32>
    %c256_i32_6 = arith.constant 256 : i32
    %13 = vector.broadcast %c256_i32_6 : i32 to vector<1x256xi32>
    %14 = arith.cmpi slt, %10, %13 : vector<1x256xi32>
    %15 = arith.andi %12, %14 : vector<1x256xi1>
    %cst = arith.constant dense<0xFF800000> : vector<256xf32>
    %16 = vector.multi_reduction <maximumf>, %4, %cst [0] : vector<4x256xf32> to vector<256xf32>
    %17 = vector.shape_cast %16 : vector<256xf32> to vector<1x256xf32>
    %18 = vector.broadcast %17 : vector<1x256xf32> to vector<4x256xf32>
    %19 = arith.subf %4, %18 : vector<4x256xf32>
    %20 = math.exp %19 : vector<4x256xf32>
    %cst_7 = arith.constant dense<0.000000e+00> : vector<256xf32>
    %21 = vector.multi_reduction <add>, %20, %cst_7 [0] : vector<4x256xf32> to vector<256xf32>
    %22 = vector.shape_cast %21 : vector<256xf32> to vector<1x256xf32>
    %23 = math.log %22 : vector<1x256xf32>
    %24 = arith.addf %17, %23 : vector<1x256xf32>
    %25 = tpu.iota {dimensions = array<i32: 0>} : vector<4x256xi32>
    %26 = vector.broadcast %6 : vector<1x256xi32> to vector<4x256xi32>
    %27 = arith.cmpi eq, %25, %26 : vector<4x256xi32>
    %cst_8 = arith.constant 0.000000e+00 : f32
    %28 = vector.broadcast %cst_8 : f32 to vector<4x256xf32>
    %29 = arith.select %27, %4, %28 : vector<4x256xi1>, vector<4x256xf32>
    %cst_9 = arith.constant dense<0.000000e+00> : vector<256xf32>
    %30 = vector.multi_reduction <add>, %29, %cst_9 [0] : vector<4x256xf32> to vector<256xf32>
    %31 = vector.shape_cast %30 : vector<256xf32> to vector<1x256xf32>
    %32 = arith.subf %24, %31 : vector<1x256xf32>
    %cst_10 = arith.constant 0.000000e+00 : f32
    %33 = vector.broadcast %cst_10 : f32 to vector<1x256xf32>
    %34 = arith.maximumf %32, %33 : vector<1x256xf32>
    %cst_11 = arith.constant 0.000000e+00 : f32
    %35 = vector.broadcast %cst_11 : f32 to vector<1x256xf32>
    %36 = arith.select %15, %34, %35 : vector<1x256xi1>, vector<1x256xf32>
    %cst_12 = arith.constant 0.000000e+00 : f32
    %37 = vector.broadcast %cst_12 : f32 to vector<1x256xf32>
    %38 = arith.subf %37, %36 : vector<1x256xf32>
    %39 = math.exp %38 : vector<1x256xf32>
    %cst_13 = arith.constant 1.000000e+00 : f32
    %40 = vector.broadcast %cst_13 : f32 to vector<1x256xf32>
    %41 = arith.subf %40, %39 : vector<1x256xf32>
    %42 = arith.mulf %41, %41 : vector<1x256xf32>
    %cst_14 = arith.constant 1.000000e+00 : f32
    %43 = vector.broadcast %cst_14 : f32 to vector<1x256xf32>
    %44 = arith.mulf %43, %42 : vector<1x256xf32>
    %45 = arith.mulf %44, %36 : vector<1x256xf32>
    %c0_15 = arith.constant 0 : index
    %c0_16 = arith.constant 0 : index
    %46 = vector.load %arg5[%c0_15, %c0_16] : memref<1x256xf32, #tpu.memory_space<vmem>>, vector<1x256xf32>
    %47 = arith.addf %46, %45 : vector<1x256xf32>
    %c0_17 = arith.constant 0 : index
    %c0_18 = arith.constant 0 : index
    %48 = vector.load %arg5[%c0_17, %c0_18] : memref<1x256xf32, #tpu.memory_space<vmem>>, vector<1x256xf32>
    tpu.vector_store %arg5[%c0_17, %c0_18], %47 {strides = array<i32>} : memref<1x256xf32, #tpu.memory_space<vmem>>, vector<1x256xf32>,
    %c0_i32_19 = arith.constant 0 : i32
    %49 = arith.cmpi eq, %arg1, %c0_i32_19 : i32
    %50 = arith.extui %49 : i1 to i32
    %c0_i32_20 = arith.constant 0 : i32
    %51 = arith.cmpi ne, %50, %c0_i32_20 : i32
    scf.if %51 {
      %c0_21 = arith.constant 0 : index
      %c0_22 = arith.constant 0 : index
      %52 = vector.load %arg5[%c0_21, %c0_22] : memref<1x256xf32, #tpu.memory_space<vmem>>, vector<1x256xf32>
      %cst_23 = arith.constant dense<0.000000e+00> : vector<1xf32>
      %53 = vector.multi_reduction <add>, %52, %cst_23 [1] : vector<1x256xf32> to vector<1xf32>
      %54 = vector.shape_cast %53 : vector<1xf32> to vector<1x1xf32>
      %55 = vector.shape_cast %54 : vector<1x1xf32> to vector<1x1x1xf32>
      %c0_24 = arith.constant 0 : index
      %c0_25 = arith.constant 0 : index
      %c0_26 = arith.constant 0 : index
      %56 = vector.load %arg4[%c0_24, %c0_25, %c0_26] : memref<1x1x1xf32, #tpu.memory_space<vmem>>, vector<1x1x1xf32>
      tpu.vector_store %arg4[%c0_24, %c0_25, %c0_26], %55 {strides = array<i32>} : memref<1x1x1xf32, #tpu.memory_space<vmem>>, vector<1x1x1xf32>,
    } else {
    }
    return
  }
  func.func @transform_0(%arg0: i32, %arg1: i32) -> (i32, i32, i32) {
    %c0_i32 = arith.constant 0 : i32
    %c0_i32_0 = arith.constant 0 : i32
    return %arg0, %c0_i32, %arg1 : i32, i32, i32
  }
  func.func @transform_1(%arg0: i32, %arg1: i32) -> (i32, i32, i32) {
    %c0_i32 = arith.constant 0 : i32
    %c0_i32_0 = arith.constant 0 : i32
    return %arg0, %c0_i32, %arg1 : i32, i32, i32
  }
  func.func @transform_2(%arg0: i32, %arg1: i32) -> (i32, i32, i32) {
    %c0_i32 = arith.constant 0 : i32
    %c0_i32_0 = arith.constant 0 : i32
    %c0_i32_1 = arith.constant 0 : i32
    return %arg0, %c0_i32, %c0_i32_0 : i32, i32, i32
  }
}

</mosaic_0001>

<bundles_post_ra>
// kernel: tpu_custom_call.1
= control target key start
LH: loop header
LB: loop body
LE: loop exit
PB: predicated region body
PF: predicated region fallthrough
CT: control target
= control target key end

     0   :  { %7 = vsyncpa [#allocation4], 0  ;;  %s914_s0 = inlined_call_operand.hbm [shape: f32[2,4,256], index: 0, kind: input, shape index: {}]   ;;  %s915_s1 = inlined_call_operand.hbm [shape: s32[2,1,256], index: 1, kind: input, shape index: {}]   ;;  %s916_s2 = inlined_call_operand.vmem [shape: f32[2,1,1], index: 2, kind: output, shape index: {}]  }
   0x1   :  { %9 = vsyncpa [#allocation4 + $0x1], 0 }
   0x2   :  { %10 = vsyncpa [#allocation6], 0 }
   0x3   :  { %12 = vsyncpa [#allocation6 + $0x1], 0  ;;  %s714_s9 = smov 0   ;;  %s716_s10 = smov 0  }
   0x4   :  { %s718_s11 = smov 0   ;;  %s720_s12 = smov 0  }
   0x5   :  { %s722_s13 = smov 0   ;;  %s724_s14 = smov 0  }
   0x6 LB: > { %s489_s15 = sadd.s32 4294967295, %s692_s14   ;;  %s30_s16 = sadd.s32 1, %s688_s13  ;;  %s692_s14 = sphi %s724_s14, %s18_s14   ;;  %s688_s13 = sphi %s722_s13, %s932_s13   ;;  %s684_s12 = sphi %s720_s12, %s931_s12   ;;  %s680_s11 = sphi %s718_s11, %s930_s11   ;;  %s676_s10 = sphi %s716_s10, %s929_s10   ;;  %s672_s9 = sphi %s714_s9, %s928_s9  }
   0x7   : > { %p32_p0 = scmp.ge.s32.totalorder %s30_s16, 2  ;;  %s39_s17 = sadd.s32 1, %s680_s11 }
   0x8   : > { %p46_p1 = scmp.ne.s32.totalorder %s680_s11, %s676_s10  ;;  %p47_p2 = scmp.eq.s32.totalorder %s692_s14, 0 }
   0x9   : > { %s934_s16 = smov (%p32_p0, %s30_s16), 0  ;;  %p52_p4 = scmp.ne.s32.totalorder %s676_s10, %s672_s9 }
   0xa   : > { %p750_p3 = por %p47_p2, %p46_p1  ;;  %s34_s19 = ssub.s32 %s688_s13, %s934_s16 }
   0xb   : > { %p53_p5 = scmp.eq.s32.totalorder %s489_s15, 0  ;;  %p37_p6 = scmp.eq.s32.totalorder %s34_s19, 0 }
   0xc   : > { %p517_p8 = scmp.lt.s32.totalorder %s692_s14, 2  ;;  %s766_s22 = sand.u32 1, %s680_s11  }
   0xd   : > { %p757_p7 = por %p53_p5, %p52_p4  ;;  %s504_s23 = sshll.u32 %s688_s13, 7 }
   0xe   : > { %s763_s21 = scalar_select %p37_p6, %s680_s11, %s39_s17  }
   0xf   : > { %s919_s20 = scalar_select %p757_p7, 1, 0 }
  0x10   : > { %s493_s24 = sshll.u32 %s766_s22, 3  ;;  %s773_s27 = scalar_lea.hbm %s914_s0, %s504_s23 }
  0x11   : > { %s134_s28 = scalar_lea.vmem [#allocation3], %s493_s24  ;;  %p777_p9 = pnand %p517_p8, %p750_p3 }
  0x12   : > { %s144_s29 = sshll.u32 %s134_s28, 4  ;;  %s131_s3 = scalar_lea.sflag [#allocation4], %s766_s22  ;;  %s781_s29 = int_to_ptr.vmem [resolvable:$true] %s144_s29 }
  0x13   : > { %s578_s4 = scalar_lea.hbm %s773_s27, 128  ;;  %p580_p13 = pneg %p777_p9 }
  0x14   : > { %p579_p12 = scmp.ne.s32.totalorder %s773_s27, %s578_s4  ;;  %s583_s7 = scalar_lea.hbm %s914_s0, 256 }
  0x15   : > { %p584_p2 = scmp.lt.u32.totalorder %s773_s27, %s914_s0  ;;  %p585_p3 = scmp.lt.u32.totalorder %s583_s7, %s578_s4 }
  0x16   : > { %p581_p0 = pnand %p580_p13, %p579_p12  ;;  %p587_p5 = scmp.lt.u32.totalorder %s578_s4, %s773_s27 }
  0x17   : > { %p586_p4 = por %p585_p3, %p584_p2 }
  0x18   : > { %p582_p1 = pneg %p581_p0 }
  0x19   : > { %p588_p6 = por %p587_p5, %p586_p4 }
  0x1b   : > { %p589_p8 = pnand %p588_p6, %p582_p1 }
  0x1d   : > { %592 = shalt.err (!%p589_p8)
}
  0x1e   : > { %s593_s15 = scalar_lea.vmem %s781_s29, 128  ;;  %s694_s17 = smov [#allocation3]  }
  0x1f   : > { %p594_p12 = scmp.ne.s32.totalorder %s781_s29, %s593_s15  ;;  %s598_s18 = sshll.u32 %s694_s17, 4  ;;  %s599_s18 = int_to_ptr.vmem [resolvable:$false] %s598_s18 }
  0x20   : > { %s600_s19 = scalar_lea.vmem %s599_s18, 256  ;;  %p601_p11 = scmp.lt.s32.totalorder %s781_s29, %s599_s18 }
  0x21   : > { %p596_p0 = pnand %p594_p12, %p580_p13  ;;  %p602_p2 = scmp.lt.s32.totalorder %s600_s19, %s593_s15 }
  0x23   : > { %p597_p10 = pneg %p596_p0  ;;  %p603_p3 = por %p602_p2, %p601_p11 }
  0x25   : > { %p604_p4 = pnand %p603_p3, %p597_p10 }
  0x27   : > { %607 = shalt.err (!%p604_p4)
}
  0x28   : > { %513 = dma.hbm_to_vmem [thread:$0]  (!%p777_p9), %s773_s27, 128, %s781_s29, %s131_s3  }
  0x29   : > { %p921_p1 = scmp.lt.s32.totalorder %s692_s14, 3  ;;  %p922_p5 = scmp.ge.s32.totalorder %s692_s14, 1 }
  0x2a   : > { %s496_s24 = sshll.u32 %s766_s22, 1  ;;  %s505_s25 = sshll.u32 %s688_s13, 5 }
  0x2b   : > { %p815_p6 = pnand %p922_p5, %p921_p1  ;;  %s824_s4 = scalar_lea.hbm %s915_s1, %s505_s25 }
  0x2c   : > { %s155_s5 = scalar_lea.vmem [#allocation5], %s496_s24  ;;  %s152_s27 = scalar_lea.sflag [#allocation6], %s766_s22 }
  0x2d   : > { %s923_s23 = scalar_select %p815_p6, 1, 0 }
  0x2e   : > { %s165_s6 = sshll.u32 %s155_s5, 4  ;;  %s608_s29 = scalar_lea.hbm %s824_s4, 32  ;;  %s166_s6 = int_to_ptr.vmem [resolvable:$true] %s165_s6 }
  0x2f   : > { %p609_p10 = scmp.ne.s32.totalorder %s824_s4, %s608_s29  ;;  %s613_s8 = scalar_lea.hbm %s915_s1, 64 }
  0x30   : > { %p614_p12 = scmp.lt.u32.totalorder %s824_s4, %s915_s1  ;;  %p615_p0 = scmp.lt.u32.totalorder %s613_s8, %s608_s29 }
  0x31   : > { %p611_p11 = pnand %p609_p10, %p580_p13  ;;  %p617_p3 = scmp.lt.u32.totalorder %s608_s29, %s824_s4 }
  0x32   : > { %p616_p2 = por %p615_p0, %p614_p12 }
  0x33   : > { %p612_p8 = pneg %p611_p11 }
  0x34   : > { %p618_p4 = por %p617_p3, %p616_p2 }
  0x36   : > { %p619_p1 = pnand %p618_p4, %p612_p8 }
  0x38   : > { %622 = shalt.err (!%p619_p1)
}
  0x39   : > { %s623_s22 = scalar_lea.vmem %s166_s6, 32  ;;  %s695_s17 = smov [#allocation5]  }
  0x3a   : > { %p624_p5 = scmp.ne.s32.totalorder %s166_s6, %s623_s22  ;;  %s628_s18 = sshll.u32 %s695_s17, 4  ;;  %s629_s18 = int_to_ptr.vmem [resolvable:$false] %s628_s18 }
  0x3b   : > { %s630_s19 = scalar_lea.vmem %s629_s18, 64  ;;  %p631_p7 = scmp.lt.s32.totalorder %s166_s6, %s629_s18 }
  0x3c   : > { %p626_p10 = pnand %p624_p5, %p580_p13  ;;  %p632_p6 = scmp.lt.s32.totalorder %s630_s19, %s623_s22 }
  0x3e   : > { %p627_p11 = pneg %p626_p10  ;;  %p633_p0 = por %p632_p6, %p631_p7 }
  0x40   : > { %p634_p12 = pnand %p633_p0, %p627_p11 }
  0x42   : > { %637 = shalt.err (!%p634_p12)
}
  0x43   : > { %516 = dma.hbm_to_vmem [thread:$0]  (!%p777_p9), %s824_s4, 32, %s166_s6, %s152_s27  }
  0x44   : > { %p924_p8 = scmp.ne.s32.totalorder %s923_s23, 0 }
  0x45   : > { %s176_s24 = sand.u32 (!%p924_p8), 1, %s676_s10   ;;  %p925_p13 = scmp.ne.s32.totalorder (!%p924_p8), %s919_s20, 0 }
  0x46   : > { %174 = sbr.rel (%p924_p8) target bundleno = 334 (0x14e), region = 28  ;;  %s500_s25 = sshll.u32 (!%p924_p8), %s176_s24, 3 }
  0x47   : > { %s177_s26 = scalar_lea.sflag (!%p924_p8), [#allocation4], %s176_s24  ;;  %s180_s28 = scalar_lea.vmem (!%p924_p8), [#allocation3], %s500_s25 }
  0x4d   : > { %663 = dma.done.wait (%p925_p13), %s177_s26, 128  }
  0x4e   : > { %665 = vsyncadd (%p925_p13), %s177_s26, 4294967168  ;;  %s501_s5 = sshll.u32 %s176_s24, 1  ;;  %s186_s29 = scalar_lea.sflag [#allocation6], %s176_s24 }
  0x4f   : > { %s189_s30 = scalar_lea.vmem [#allocation5], %s501_s5 }
  0x50   : > { %667 = dma.done.wait (%p925_p13), %s186_s29, 32  }
  0x51   : > { %669 = vsyncadd (%p925_p13), %s186_s29, 4294967264  ;;  %v222_v0 = vlaneseq  ;;  %v696_v2 = vmov 0.0   ;;  %vm261_vm1 = vcmask 1043456   ;;  %v227_v3 = vld [vmem:[%s180_s28] sm:$0xff]  ;;  %v868_v24 = vld [vmem:[%s189_s30] sm:$0x3] }
  0x52   : > { %v259_v4 = vcombine.high %v227_v3, %v227_v3  ;;  %v262_v5 = vsel %vm261_vm1, %v227_v3, -inf  ;;  %v697_v53 = vmov 1966171168   ;;  %v698_v60 = vmov 1   ;;  %p215_p7 = scmp.lt.s32.totalorder %s684_s12, 1 }
  0x53   : > { %vm857_vm0 = vcmp.lt.s32.totalorder %v222_v0, 256  ;;  %v263_v6 = vrot.slane %v262_v5, 4  ;;  %v865_v19 = vshrl.u32 %v222_v0, 7  ;;  %v243_v54 = vunpack.c.l.s4 %v697_v53 }
  0x54   : > { %226 = vst.msk [vmem:[#allocation2] sm:$0x3] %vm857_vm0, %v696_v2  ;;  %v269_v7 = vsel %vm261_vm1, %v259_v4, -inf  ;;  %v241_v61 = vcombine.low %v698_v60, %v698_v60  ;;  %vm236_vm4 = vcmp.ne.s32.totalorder %v868_v24, 255  ;;  %vm385_vm7 = vcmask 1040384   ;;  %s936_s12 = smov (!%p215_p7, %s684_s12), 1 }
  0x55   : > { %v264_v8 = vmax.f32 %v262_v5, %v263_v6  ;;  %v270_v9 = vrot.slane %v269_v7, 4  ;;  %v310_v23 = vsub.s32 0, %v865_v19  ;;  %v314_v25 = vsub.s32 1, %v865_v19  ;;  %s217_s4 = scalar_lea.vmem %s916_s2, %s936_s12 }
  0x56   : > { %v244_v57 = vunpack.c.0.s8 %v243_v54  ;;  %vm391_vm8 = vcmask 0  }
  0x57   : > { %v265_v10 = vrot.slane %v264_v8, 2  ;;  %v271_v11 = vmax.f32 %v269_v7, %v270_v9  ;;  %v311_v26 = vrot.slane %v868_v24, %v310_v23  ;;  %v315_v27 = vrot.slane %v868_v24, %v314_v25 }
  0x58   : > { %v247_v62 = vsub.s32 %v244_v57, %v865_v19 }
  0x59   : > { %v266_v12 = vmax.f32 %v264_v8, %v265_v10  ;;  %v272_v13 = vrot.slane %v271_v11, 2  ;;  %vm316_vm2 = vcmp.eq.s32.totalorder %v865_v19, %v311_v26  ;;  %vm317_vm3 = vcmp.eq.s32.totalorder %v865_v19, %v315_v27 }
  0x5a   : > { %v318_v28 = vsel %vm316_vm2, %v227_v3, 0.0  ;;  %v319_v32 = vsel %vm317_vm3, %v259_v4, 0.0  ;;  %v248_v5 = vrot.slane %v241_v61, %v247_v62 }
  0x5b   : > { %v267_v14 = vrot.slane %v266_v12, 1  ;;  %v273_v15 = vmax.f32 %v271_v11, %v272_v13  ;;  %v320_v34 = vsel %vm261_vm1, %v318_v28, 0.0  ;;  %v327_v38 = vsel %vm261_vm1, %v319_v32, 0.0  ;;  %v363_v28 = vld [vmem:[#allocation2] sm:$0x3] }
  0x5c   : > { %v321_v39 = vrot.slane %v320_v34, 4  ;;  %v328_v42 = vrot.slane %v327_v38, 4  ;;  %v255_v11 = vrot.slane %v248_v5, %v247_v62 }
  0x5d   : > { %v268_v16 = vmax.f32 %v266_v12, %v267_v14  ;;  %v274_v17 = vrot.slane %v273_v15, 1 }
  0x5e   : > { %v322_v45 = vadd.f32 %v321_v39, %v320_v34  ;;  %v329_v48 = vadd.f32 %v328_v42, %v327_v38  ;;  %vm256_vm5 = vcmp.ne.s32.totalorder %v255_v11, 0 }
  0x5f   : > { %v275_v18 = vmax.f32 %v273_v15, %v274_v17  ;;  %vm257_vm6 = vmand %vm236_vm4, %vm256_vm5 }
  0x60   : > { %v323_v51 = vrot.slane %v322_v45, 2  ;;  %v330_v55 = vrot.slane %v329_v48, 2 }
  0x61   : > { %v278_v20 = vcombine.low %v268_v16, %v275_v18 }
  0x62   : > { %v324_v56 = vadd.f32 %v323_v51, %v322_v45  ;;  %v331_v58 = vadd.f32 %v330_v55, %v329_v48 }
  0x63   : > { %v280_v21 = vsub.f32 %v227_v3, %v278_v20 }
  0x64   : > { %v325_v59 = vrot.slane %v324_v56, 1  ;;  %v332_v63 = vrot.slane %v331_v58, 1 }
  0x65   : > { %v281_v22 = vmul.f32 1.442695, %v280_v21 }
  0x66   : > { %v326_v3 = vadd.f32 %v325_v59, %v324_v56  ;;  %v333_v8 = vadd.f32 %v332_v63, %v331_v58 }
  0x67   : > { %570 = vpow2.f32 %v281_v22 }
  0x71   : > { %v571_v29 = vpop.eup %570 }
  0x72   : > { %v284_v30 = vcombine.high %v571_v29, %v571_v29  ;;  %v286_v31 = vsel %vm261_vm1, %v571_v29, 0.0 }
  0x73   : > { %v287_v33 = vrot.slane %v286_v31, 4 }
  0x74   : > { %v293_v35 = vsel %vm261_vm1, %v284_v30, 0.0 }
  0x75   : > { %v288_v36 = vadd.f32 %v287_v33, %v286_v31  ;;  %v294_v37 = vrot.slane %v293_v35, 4 }
  0x77   : > { %v289_v40 = vrot.slane %v288_v36, 2  ;;  %v295_v41 = vadd.f32 %v294_v37, %v293_v35 }
  0x79   : > { %v290_v43 = vadd.f32 %v289_v40, %v288_v36  ;;  %v296_v44 = vrot.slane %v295_v41, 2 }
  0x7b   : > { %v291_v46 = vrot.slane %v290_v43, 1  ;;  %v297_v47 = vadd.f32 %v296_v44, %v295_v41 }
  0x7d   : > { %v292_v49 = vadd.f32 %v291_v46, %v290_v43  ;;  %v298_v50 = vrot.slane %v297_v47, 1 }
  0x7f   : > { %v299_v52 = vadd.f32 %v298_v50, %v297_v47  ;;  %572 = vlog2.f32 %v292_v49 }
  0x81   : > { %574 = vlog2.f32 %v299_v52 }
  0x89   : > { %v573_v0 = vpop.eup %572 }
  0x8a   : > { %v301_v2 = vmul.f32 0.6931472, %v573_v0 }
  0x8b   : > { %v575_v4 = vpop.eup %574 }
  0x8c   : > { %v303_v6 = vmul.f32 0.6931472, %v575_v4  ;;  %v304_v7 = vadd.f32 %v301_v2, %v268_v16 }
  0x8e   : > { %v305_v9 = vadd.f32 %v303_v6, %v275_v18  ;;  %v334_v10 = vsub.f32 %v304_v7, %v326_v3 }
  0x90   : > { %v335_v12 = vsub.f32 %v305_v9, %v333_v8  ;;  %v336_v13 = vmax.f32 %v334_v10, 0.0 }
  0x92   : > { %v337_v14 = vmax.f32 %v335_v12, 0.0 }
  0x94   : > { %v340_v15 = vcombine.low %v336_v13, %v337_v14 }
  0x96   : > { %v347_v17 = vrot.slane %v340_v15, %v247_v62 }
  0x98   : > { %v354_v20 = vrot.slane %v347_v17, %v247_v62 }
  0x9a   : > { %v356_v21 = vsel %vm257_vm6, %v354_v20, 0.0 }
  0x9b   : > { %v357_v22 = vsub.f32 0.0, %v356_v21 }
  0x9d   : > { %v358_v26 = vmul.f32 1.442695, %v357_v22 }
  0x9f   : > { %576 = vpow2.f32 %v358_v26 }
  0xa9   : > { %v577_v16 = vpop.eup %576 }
  0xaa   : > { %v360_v18 = vsub.f32 1.0, %v577_v16 }
  0xac   : > { %v361_v27 = vmul.f32 %v360_v18, %v360_v18 }
  0xae   : > { %v362_v29 = vmul.f32 %v361_v27, %v356_v21 }
  0xb0   : > { %v364_v30 = vadd.f32 %v363_v28, %v362_v29 }
  0xb2   : > { %369 = vst.msk [vmem:[#allocation2] sm:$0x3] %vm857_vm0, %v364_v30 }
  0xb9   : > { %v373_v24 = vld [vmem:[#allocation2] sm:$0x3] }
  0xba   : > { %v378_v31 = vrot.slane %v373_v24, %v310_v23  ;;  %v382_v32 = vrot.slane %v373_v24, %v314_v25 }
  0xbc   : > { %v386_v33 = vsel %vm385_vm7, %v378_v31, 0.0  ;;  %v387_v34 = vsel %vm385_vm7, %v382_v32, 0.0 }
  0xbd   : > { %v388_v35 = vadd.f32 %v387_v34, %v386_v33 }
  0xbf   : > { %389 = vadd.xlane.f32.xlu0 %v388_v35 }
 0x14c   : > { %v390_v1 = vpop.xlane.xlu0 %389 }
 0x14d   : > { %392 = vst.msk [vmem:[%s217_s4] sm:$0x1] %vm391_vm8, %v390_v1 }
 0x14e PF: > { %s18_s14 = sadd.s32 1, %s692_s14   ;;  %s928_s9 = smov %s676_s10 }
 0x14f   : > { %p15_p9 = scmp.ge.s32.totalorder %s18_s14, 4   ;;  %s929_s10 = smov %s680_s11 }
 0x150   : > { %s930_s11 = smov %s763_s21  ;;  %s931_s12 = smov %s688_s13 }
 0x151   : > { %s932_s13 = smov %s934_s16  ;;  %17 = sbr.rel (!%p15_p9) target bundleno = 6 (0x6), region = 89 }
 0x158   :  { %410 = vsyncpa [#allocation4], 1 }
 0x159   :  { %412 = vsyncpa [#allocation4 + $0x1], 1 }
 0x15a   :  { %413 = vsyncpa [#allocation6], 1 }
 0x15b   :  { %415 = vsyncpa [#allocation6 + $0x1], 1 }

</bundles_post_ra>
